<compile_context>
chip_gen: v7x
topology: tpu7x:2x2x1
jax: 0.10.0
libtpu: 0.0.40
codegen_flags: <defaults>
</compile_context>

<pallas_src>
import functools

import jax
import jax.numpy as jnp
from jax.experimental import pallas as pl
from jax.experimental.pallas import tpu as pltpu


def _interp_kernel(a_ref, z_ref, o_ref, *, latent_size, n_actions):
    # a_ref: (TB, n_actions)   raw actions (un-padded)
    # z_ref: (TB, 2*L)         row = [z_ref | z_trans]
    # o_ref: (TB, L)
    L = latent_size
    z = z_ref[...]
    z_r = z[:, :L]
    z_t = z[:, L:]
    a = a_ref[...]

    if n_actions == L:
        o_ref[...] = (z_r + a * (z_t - z_r)).astype(o_ref.dtype)
    else:
        # Columns >= n_actions have an implicit action of 0 -> output = z_ref.
        o_ref[...] = z_r.astype(o_ref.dtype)
        z_r_h = z_r[:, :n_actions]
        z_t_h = z_t[:, :n_actions]
        o_ref[:, :n_actions] = (z_r_h + a * (z_t_h - z_r_h)).astype(o_ref.dtype)


def _choose_block_rows(batch, latent_size, n_actions, itemsize):
    # Per-row bytes resident per tile: z (2L) + out (L) + actions (NA).
    row_bytes = (3 * latent_size + n_actions) * itemsize
    tb = (4 * 1024 * 1024) // max(row_bytes, 1)   # ~4 MiB per buffer set
    tb = max(8, min(512, (tb // 8) * 8))          # multiple of 8, capped at 512
    if batch <= tb:
        return batch                              # full-dim block is always legal
    return tb


def fixed_interp_comp(z, actions, latent_size):
    """z: anything reshapeable to (B, 2*latent_size) row-major (same as
    torch reshape(-1, 2, latent_size)).  actions: (B, n_actions),
    n_actions <= latent_size."""
    batch, n_actions = actions.shape
    assert latent_size >= n_actions
    z2 = z.reshape(batch, 2 * latent_size)
    out_dtype = jnp.result_type(z2.dtype, actions.dtype)

    tb = _choose_block_rows(batch, latent_size, n_actions,
                            jnp.dtype(out_dtype).itemsize)
    grid = (pl.cdiv(batch, tb),)

    kernel = functools.partial(
        _interp_kernel, latent_size=latent_size, n_actions=n_actions
    )

    return pl.pallas_call(
        kernel,
        out_shape=jax.ShapeDtypeStruct((batch, latent_size), out_dtype),
        grid_spec=pl.GridSpec(
            grid=grid,
            in_specs=[
                pl.BlockSpec((tb, n_actions), lambda i: (i, 0)),
                pl.BlockSpec((tb, 2 * latent_size), lambda i: (i, 0)),
            ],
            out_specs=pl.BlockSpec((tb, latent_size), lambda i: (i, 0)),
        ),
        compiler_params=pltpu.CompilerParams(
            dimension_semantics=("parallel",),
            vmem_limit_bytes=32 * 1024 * 1024,
        ),
    )(actions, z2)


def _reference(z, actions, latent_size):
    batch = actions.shape[0]
    n_dummy = latent_size - actions.shape[1]
    a_full = jnp.concatenate(
        [actions, jnp.zeros((batch, n_dummy), dtype=actions.dtype)], axis=1
    )
    z3 = z.reshape(-1, 2, latent_size)
    return z3[:, 0, :] * (1.0 - a_full) + z3[:, 1, :] * a_full


if __name__ == "__main__":
    key = jax.random.PRNGKey(0)
    k1, k2 = jax.random.split(key)

    batch = 16
    n_actions = 5
    latent_size = 128  # lane-dense example (multiple of 128); any L >= n_actions works

    z = jax.random.normal(k1, (batch, 2 * latent_size), dtype=jnp.float32)
    actions = jax.random.uniform(k2, (batch, n_actions), dtype=jnp.float32)

    out = jax.block_until_ready(fixed_interp_comp(z, actions, latent_size))

    ref = _reference(z, actions, latent_size)
    assert out.shape == (batch, latent_size)
    assert jnp.allclose(out, ref, atol=1e-5, rtol=1e-5)

    print("KERNEL_OK")
</pallas_src>

<mosaic_0001>
module attributes {stable_mosaic.version = 11 : i64} {
  func.func @_interp_kernel(%arg0: i32, %arg1: memref<16x5xf32, #tpu.memory_space<vmem>>, %arg2: memref<16x256xf32, #tpu.memory_space<vmem>>, %arg3: memref<16x128xf32, #tpu.memory_space<vmem>>) attributes {dimension_semantics = [#tpu.dimension_semantics<parallel>], iteration_bounds = array<i64: 1>, scalar_prefetch = 0 : i64, scratch_operands = 0 : i64, tpu.core_type = #tpu.core_type<tc>, window_params = [{transform_indices = @transform_0, window_bounds = array<i64: 16, 5>}, {transform_indices = @transform_1, window_bounds = array<i64: 16, 256>}, {transform_indices = @transform_2, window_bounds = array<i64: 16, 128>}]} {
    %c0 = arith.constant 0 : index
    %c0_0 = arith.constant 0 : index
    %0 = vector.load %arg2[%c0, %c0_0] : memref<16x256xf32, #tpu.memory_space<vmem>>, vector<16x256xf32>
    %1 = vector.extract_strided_slice %0 {offsets = [0, 0], sizes = [16, 128], strides = [1, 1]} : vector<16x256xf32> to vector<16x128xf32>
    %2 = vector.extract_strided_slice %0 {offsets = [0, 128], sizes = [16, 128], strides = [1, 1]} : vector<16x256xf32> to vector<16x128xf32>
    %c0_1 = arith.constant 0 : index
    %c0_2 = arith.constant 0 : index
    %3 = vector.load %arg1[%c0_1, %c0_2] : memref<16x5xf32, #tpu.memory_space<vmem>>, vector<16x5xf32>
    %c0_3 = arith.constant 0 : index
    %c0_4 = arith.constant 0 : index
    %4 = vector.load %arg3[%c0_3, %c0_4] : memref<16x128xf32, #tpu.memory_space<vmem>>, vector<16x128xf32>
    tpu.vector_store %arg3[%c0_3, %c0_4], %1 {strides = array<i32>} : memref<16x128xf32, #tpu.memory_space<vmem>>, vector<16x128xf32>,
    %5 = vector.extract_strided_slice %1 {offsets = [0, 0], sizes = [16, 5], strides = [1, 1]} : vector<16x128xf32> to vector<16x5xf32>
    %6 = vector.extract_strided_slice %2 {offsets = [0, 0], sizes = [16, 5], strides = [1, 1]} : vector<16x128xf32> to vector<16x5xf32>
    %7 = arith.subf %6, %5 : vector<16x5xf32>
    %8 = arith.mulf %3, %7 : vector<16x5xf32>
    %9 = arith.addf %5, %8 : vector<16x5xf32>
    %c0_5 = arith.constant 0 : index
    %c0_6 = arith.constant 0 : index
    %10 = vector.load %arg3[%c0_5, %c0_6] : memref<16x128xf32, #tpu.memory_space<vmem>>, vector<16x5xf32>
    tpu.vector_store %arg3[%c0_5, %c0_6], %9 {strides = array<i32>} : memref<16x128xf32, #tpu.memory_space<vmem>>, vector<16x5xf32>,
    return
  }
  func.func @transform_0(%arg0: i32) -> (i32, i32) {
    %c0_i32 = arith.constant 0 : i32
    %c0_i32_0 = arith.constant 0 : i32
    return %arg0, %c0_i32 : i32, i32
  }
  func.func @transform_1(%arg0: i32) -> (i32, i32) {
    %c0_i32 = arith.constant 0 : i32
    %c0_i32_0 = arith.constant 0 : i32
    return %arg0, %c0_i32 : i32, i32
  }
  func.func @transform_2(%arg0: i32) -> (i32, i32) {
    %c0_i32 = arith.constant 0 : i32
    %c0_i32_0 = arith.constant 0 : i32
    return %arg0, %c0_i32 : i32, i32
  }
}

</mosaic_0001>

<bundles_post_ra>
// kernel: tpu_custom_call.1
= control target key start
LH: loop header
LB: loop body
LE: loop exit
PB: predicated region body
PF: predicated region fallthrough
CT: control target
= control target key end

     0   :  { %7 = vsyncpa [#allocation3], 0  ;;  %s165_s0 = inlined_call_operand.vmem [shape: f32[16,5], index: 0, kind: input, shape index: {}]   ;;  %s166_s1 = inlined_call_operand.hbm [shape: f32[16,256], index: 1, kind: input, shape index: {}]   ;;  %s167_s2 = inlined_call_operand.hbm [shape: f32[16,128], index: 2, kind: output, shape index: {}]  }
   0x1   :  { %8 = vsyncpa [#allocation4], 0  ;;  %s114_s9 = smov [#allocation2]   ;;  %s66_s13 = scalar_lea.hbm %s166_s1, 512 }
   0x2   :  { %s16_s10 = sshll.u32 %s114_s9, 4  ;;  %p67_p0 = scmp.ne.s32.totalorder %s166_s1, %s66_s13  ;;  %s17_s10 = int_to_ptr.vmem [resolvable:$true] %s16_s10 }
   0x3   :  { %p70_p1 = scmp.lt.u32.totalorder %s66_s13, %s166_s1 }
   0x5   :  { %p72_p2 = pnand %p70_p1, %p67_p0 }
   0x7   :  { %75 = shalt.err (!%p72_p2)
}
   0x8   :  { %s76_s18 = scalar_lea.vmem %s17_s10, 512  ;;  %p81_p4 = scmp.lt.s32.totalorder %s17_s10, %s17_s10 }
   0x9   :  { %p77_p3 = scmp.ne.s32.totalorder %s17_s10, %s76_s18  ;;  %p82_p5 = scmp.lt.s32.totalorder %s76_s18, %s76_s18 }
   0xb   :  { %p83_p6 = por %p82_p5, %p81_p4 }
   0xd   :  { %p84_p7 = pnand %p83_p6, %p77_p3 }
   0xf   :  { %87 = shalt.err (!%p84_p7)
}
  0x10   :  { %s115_s19 = smov 256   ;;  %s116_s20 = smov 16  }
  0x11   :  { %22 = dma.hbm_to_vmem [thread:$0]  %s166_s1, 512, %s17_s10, [#allocation3], %s115_s19, %s115_s19, %s116_s20  }
  0x12   :  { %110 = dma.done.wait [#allocation3], 512  }
  0x13   :  { %111 = vsyncadd [#allocation3], 4294966784  ;;  %v26_v0 = vld [vmem:[#allocation2] sm:$0xff]  ;;  %v27_v1 = vld [vmem:[#allocation2 + $0x8] sm:$0xff]  ;;  %s117_s1 = smov [#allocation5]   ;;  %vm40_vm0 = vcmask 39936  }
  0x14   :  { %v30_v2 = vld [vmem:[%s165_s0] sm:$0xff]  ;;  %32 = vst [vmem:[#allocation5] sm:$0xff] %v26_v0  ;;  %v34_v3 = vsub.f32 %v27_v1, %v26_v0  ;;  %v28_v4 = vld [vmem:[#allocation2 + $0x10] sm:$0xff]  ;;  %v29_v5 = vld [vmem:[#allocation2 + $0x18] sm:$0xff]  ;;  %s48_s27 = sshll.u32 %s117_s1, 4  ;;  %s49_s27 = int_to_ptr.vmem [resolvable:$true] %s48_s27 }
  0x15   :  { %v31_v6 = vld [vmem:[%s165_s0 + $0x8] sm:$0xff]  ;;  %33 = vst [vmem:[#allocation5 + $0x8] sm:$0xff] %v28_v4  ;;  %v35_v7 = vsub.f32 %v29_v5, %v28_v4  ;;  %s88_s28 = scalar_lea.vmem %s49_s27, 256  ;;  %p93_p9 = scmp.lt.s32.totalorder %s49_s27, %s49_s27 }
  0x16   :  { %v36_v8 = vmul.f32 %v34_v3, %v30_v2  ;;  %p89_p8 = scmp.ne.s32.totalorder %s49_s27, %s88_s28  ;;  %p94_p10 = scmp.lt.s32.totalorder %s88_s28, %s88_s28 }
  0x17   :  { %v37_v9 = vmul.f32 %v35_v7, %v31_v6 }
  0x18   :  { %v38_v10 = vadd.f32 %v36_v8, %v26_v0  ;;  %p95_p11 = por %p94_p10, %p93_p9 }
  0x19   :  { %v39_v11 = vadd.f32 %v37_v9, %v28_v4 }
  0x1a   :  { %41 = vst.msk [vmem:[#allocation5] sm:$0xff] %vm40_vm0, %v38_v10  ;;  %p96_p12 = pnand %p95_p11, %p89_p8 }
  0x1b   :  { %42 = vst.msk [vmem:[#allocation5 + $0x8] sm:$0xff] %vm40_vm0, %v39_v11 }
  0x1c   :  { %99 = shalt.err (!%p96_p12)
}
  0x1d   :  { %s100_s30 = scalar_lea.hbm %s167_s2, 256 }
  0x1e   :  { %p101_p13 = scmp.ne.s32.totalorder %s167_s2, %s100_s30  ;;  %p104_p0 = scmp.lt.u32.totalorder %s100_s30, %s167_s2 }
  0x20   :  { %p106_p1 = pnand %p104_p0, %p101_p13 }
  0x22   :  { %109 = shalt.err (!%p106_p1)
}
  0x23   :  { %s118_s7 = smov 128   ;;  %s119_s8 = smov 8  }
  0x24   :  { %54 = dma.vmem_to_hbm [thread:$0]  %s49_s27, 256, %s167_s2, [#allocation4], %s118_s7, %s118_s7, %s119_s8  }
  0x25   :  { %112 = dma.done.wait [#allocation4], 256  }
  0x26   :  { %113 = vsyncadd [#allocation4], 4294967040 }
  0x27   :  { %58 = vsyncpa [#allocation3], 1 }
  0x28   :  { %59 = vsyncpa [#allocation4], 1 }

</bundles_post_ra>
